<compile_context>
chip_gen: v6e
topology: v6e:2x2x1
jax: 0.10.0
libtpu: 0.0.40
codegen_flags: <defaults>
</compile_context>

<pallas_src>
import jax
import jax.numpy as jnp
from jax.experimental import pallas as pl
from jax.experimental.pallas import tpu as pltpu


def _round_up(x, m):
    return ((x + m - 1) // m) * m


def _pick_tile(dim, candidates):
    """Largest lane-aligned candidate that divides `dim`, else the full dim."""
    for c in candidates:
        if c <= dim and dim % c == 0:
            return c
    return dim


def _lora_block_kernel(x_ref, w_ref, b_ref, wd_ref, wu_ref, o_ref,
                       acc_base_ref, acc_down_ref):
    k = pl.program_id(2)

    @pl.when(k == 0)
    def _init():
        acc_base_ref[...] = jnp.zeros_like(acc_base_ref)
        acc_down_ref[...] = jnp.zeros_like(acc_down_ref)

    x = x_ref[...]                                            # (tm, tk) bf16
    # original module: accumulate x @ W_orig in f32
    acc_base_ref[...] += jnp.dot(x, w_ref[...],
                                 preferred_element_type=jnp.float32)
    # LoRA down projection: accumulate x @ W_down in f32 (tm, R)
    acc_down_ref[...] += jnp.dot(x, wd_ref[...],
                                 preferred_element_type=jnp.float32)

    @pl.when(k == pl.num_programs(2) - 1)
    def _finalize():
        # LoRA up projection (W_up already carries lora_multiplier).
        down = acc_down_ref[...].astype(wu_ref.dtype)          # (tm, R) bf16
        lora = jnp.dot(down, wu_ref[...],
                       preferred_element_type=jnp.float32)     # (tm, tn) f32
        out = acc_base_ref[...] + b_ref[...] + lora            # bias in f32
        o_ref[...] = out.astype(o_ref.dtype)


def lora_block_forward(x, w_orig, b_orig, w_down, w_up, lora_multiplier=1.0,
                       *, compute_dtype=jnp.bfloat16,
                       block_m=None, block_n=None, block_k=None):
    """x: (..., K); w_orig: (K, N); b_orig: (N,); w_down: (K, R); w_up: (R, N)."""
    orig_shape = x.shape
    K = orig_shape[-1]
    N = w_orig.shape[1]
    R = w_down.shape[1]
    assert w_orig.shape[0] == K and w_down.shape[0] == K
    assert w_up.shape == (R, N) and b_orig.shape == (N,)

    out_dtype = x.dtype
    x2 = x.reshape(-1, K)
    M = x2.shape[0]

    # Tile sizes: lane-aligned, bounded so resident VMEM stays small.
    tm = block_m if block_m is not None else min(256, _round_up(M, 8))
    tn = block_n if block_n is not None else _pick_tile(N, (512, 256, 128))
    tk = block_k if block_k is not None else _pick_tile(K, (1024, 512, 256, 128))

    Mp = _round_up(M, tm)
    grid = (Mp // tm, N // tn, K // tk)

    # bf16 MXU inputs (f32 accumulation inside the kernel).
    xc = x2.astype(compute_dtype)
    if Mp != M:
        xc = jnp.pad(xc, ((0, Mp - M), (0, 0)))
    wc = w_orig.astype(compute_dtype)
    wdc = w_down.astype(compute_dtype)
    # Fold lora_multiplier into W_up (tiny R x N scale, no kernel recompile).
    wuc = (w_up.astype(jnp.float32) * jnp.float32(lora_multiplier)).astype(compute_dtype)
    b2 = b_orig.astype(jnp.float32).reshape(1, N)

    # Explicit VMEM budget (v5e scoped default is 16 MiB); cap at v7x physical.
    cb = jnp.dtype(compute_dtype).itemsize
    ob = jnp.dtype(out_dtype).itemsize
    vmem_needed = (2 * ((tm * tk + tk * tn + tk * R + R * tn) * cb
                        + tn * 4 + tm * tn * ob)
                   + (tm * tn + tm * R) * 4)
    vmem_limit = int(min(64 * 1024 * 1024,
                         max(2 * vmem_needed, 32 * 1024 * 1024)))

    out = pl.pallas_call(
        _lora_block_kernel,
        out_shape=jax.ShapeDtypeStruct((Mp, N), out_dtype),
        grid_spec=pltpu.PrefetchScalarGridSpec(
            num_scalar_prefetch=0,
            grid=grid,
            in_specs=[
                pl.BlockSpec((tm, tk), lambda i, j, k: (i, k)),   # x tile
                pl.BlockSpec((tk, tn), lambda i, j, k: (k, j)),   # W_orig tile
                pl.BlockSpec((1, tn), lambda i, j, k: (0, j)),    # bias tile (f32)
                pl.BlockSpec((tk, R), lambda i, j, k: (k, 0)),    # LoRA down tile
                pl.BlockSpec((R, tn), lambda i, j, k: (0, j)),    # LoRA up tile (pre-scaled)
            ],
            out_specs=pl.BlockSpec((tm, tn), lambda i, j, k: (i, j)),
            scratch_shapes=[
                pltpu.VMEM((tm, tn), jnp.float32),   # base accumulator
                pltpu.VMEM((tm, R), jnp.float32),    # LoRA-down accumulator
            ],
        ),
        compiler_params=pltpu.CompilerParams(
            dimension_semantics=("parallel", "parallel", "arbitrary"),
            vmem_limit_bytes=vmem_limit,
        ),
    )(xc, wc, b2, wdc, wuc)

    if Mp != M:
        out = out[:M]
    return out.reshape(*orig_shape[:-1], N)


if __name__ == "__main__":
    key = jax.random.PRNGKey(0)
    batch, seq, hidden, out_dim, rank = 2, 20, 256, 256, 8
    lora_multiplier = 0.75

    k1, k2, k3, k4, k5 = jax.random.split(key, 5)
    x = jax.random.normal(k1, (batch, seq, hidden), dtype=jnp.float32)
    # weights stored as [in, out] (transpose of PyTorch nn.Linear's [out, in])
    w_orig = jax.random.normal(k2, (hidden, out_dim), dtype=jnp.float32) * 0.05
    b_orig = jax.random.normal(k3, (out_dim,), dtype=jnp.float32) * 0.01
    w_down = jax.random.normal(k4, (hidden, rank), dtype=jnp.float32) * 0.05
    # LoRA up is conventionally zero-init; use small nonzero values so the path is exercised
    w_up = jax.random.normal(k5, (rank, out_dim), dtype=jnp.float32) * 0.05

    # plain f32 reference
    x2 = x.reshape(-1, hidden)
    ref = x2 @ w_orig + b_orig + lora_multiplier * ((x2 @ w_down) @ w_up)
    ref = ref.reshape(batch, seq, out_dim)

    # 1) default tiling path
    y = lora_block_forward(x, w_orig, b_orig, w_down, w_up, lora_multiplier)
    y = jax.block_until_ready(y)
    assert jnp.allclose(y, ref, atol=3e-2, rtol=3e-2), "mismatch (default tiles)"

    # 2) forced small tiles: exercises M padding, N tiling and K accumulation
    y2 = lora_block_forward(x, w_orig, b_orig, w_down, w_up, lora_multiplier,
                            block_m=16, block_n=128, block_k=128)
    y2 = jax.block_until_ready(y2)
    assert jnp.allclose(y2, ref, atol=3e-2, rtol=3e-2), "mismatch (tiled path)"

    print("KERNEL_OK")
</pallas_src>

<mosaic_0001>
module attributes {stable_mosaic.version = 11 : i64} {
  func.func @_lora_block_kernel(%arg0: i32, %arg1: i32, %arg2: i32, %arg3: memref<40x256xbf16, #tpu.memory_space<vmem>>, %arg4: memref<256x256xbf16, #tpu.memory_space<vmem>>, %arg5: memref<1x256xf32, #tpu.memory_space<vmem>>, %arg6: memref<256x8xbf16, #tpu.memory_space<vmem>>, %arg7: memref<8x256xbf16, #tpu.memory_space<vmem>>, %arg8: memref<40x256xf32, #tpu.memory_space<vmem>>, %arg9: memref<40x256xf32, #tpu.memory_space<vmem>>, %arg10: memref<40x8xf32, #tpu.memory_space<vmem>>) attributes {dimension_semantics = [#tpu.dimension_semantics<parallel>, #tpu.dimension_semantics<parallel>, #tpu.dimension_semantics<arbitrary>], iteration_bounds = array<i64: 1, 1, 1>, scalar_prefetch = 0 : i64, scratch_operands = 2 : i64, tpu.core_type = #tpu.core_type<tc>, window_params = [{transform_indices = @transform_0, window_bounds = array<i64: 40, 256>}, {transform_indices = @transform_1, window_bounds = array<i64: 256, 256>}, {transform_indices = @transform_2, window_bounds = array<i64: 1, 256>}, {transform_indices = @transform_3, window_bounds = array<i64: 256, 8>}, {transform_indices = @transform_4, window_bounds = array<i64: 8, 256>}, {transform_indices = @transform_5, window_bounds = array<i64: 40, 256>}]} {
    %c0_i32 = arith.constant 0 : i32
    %0 = arith.cmpi eq, %arg2, %c0_i32 : i32
    %1 = arith.extui %0 : i1 to i32
    %c0_i32_0 = arith.constant 0 : i32
    %2 = arith.cmpi ne, %1, %c0_i32_0 : i32
    scf.if %2 {
      %cst_17 = arith.constant 0.000000e+00 : f32
      %17 = vector.broadcast %cst_17 : f32 to vector<40x256xf32>
      %c0_18 = arith.constant 0 : index
      %c0_19 = arith.constant 0 : index
      %18 = vector.load %arg9[%c0_18, %c0_19] : memref<40x256xf32, #tpu.memory_space<vmem>>, vector<40x256xf32>
      tpu.vector_store %arg9[%c0_18, %c0_19], %17 {strides = array<i32>} : memref<40x256xf32, #tpu.memory_space<vmem>>, vector<40x256xf32>,
      %cst_20 = arith.constant 0.000000e+00 : f32
      %19 = vector.broadcast %cst_20 : f32 to vector<40x8xf32>
      %c0_21 = arith.constant 0 : index
      %c0_22 = arith.constant 0 : index
      %20 = vector.load %arg10[%c0_21, %c0_22] : memref<40x8xf32, #tpu.memory_space<vmem>>, vector<40x8xf32>
      tpu.vector_store %arg10[%c0_21, %c0_22], %19 {strides = array<i32>} : memref<40x8xf32, #tpu.memory_space<vmem>>, vector<40x8xf32>,
    } else {
    }
    %c0 = arith.constant 0 : index
    %c0_1 = arith.constant 0 : index
    %3 = vector.load %arg3[%c0, %c0_1] : memref<40x256xbf16, #tpu.memory_space<vmem>>, vector<40x256xbf16>
    %c0_2 = arith.constant 0 : index
    %c0_3 = arith.constant 0 : index
    %4 = vector.load %arg9[%c0_2, %c0_3] : memref<40x256xf32, #tpu.memory_space<vmem>>, vector<40x256xf32>
    %c0_4 = arith.constant 0 : index
    %c0_5 = arith.constant 0 : index
    %5 = vector.load %arg4[%c0_4, %c0_5] : memref<256x256xbf16, #tpu.memory_space<vmem>>, vector<256x256xbf16>
    %cst = arith.constant dense<0.000000e+00> : vector<40x256xf32>
    %6 = tpu.matmul %3, %5, %cst {dimension_numbers = #tpu.dot_dimension_numbers<[1], [0], [0], [1], [0, 0, 1, 1], [], []>} : vector<40x256xbf16>, vector<256x256xbf16>, vector<40x256xf32> -> vector<40x256xf32>
    %7 = arith.addf %4, %6 : vector<40x256xf32>
    %c0_6 = arith.constant 0 : index
    %c0_7 = arith.constant 0 : index
    %8 = vector.load %arg9[%c0_6, %c0_7] : memref<40x256xf32, #tpu.memory_space<vmem>>, vector<40x256xf32>
    tpu.vector_store %arg9[%c0_6, %c0_7], %7 {strides = array<i32>} : memref<40x256xf32, #tpu.memory_space<vmem>>, vector<40x256xf32>,
    %c0_8 = arith.constant 0 : index
    %c0_9 = arith.constant 0 : index
    %9 = vector.load %arg10[%c0_8, %c0_9] : memref<40x8xf32, #tpu.memory_space<vmem>>, vector<40x8xf32>
    %c0_10 = arith.constant 0 : index
    %c0_11 = arith.constant 0 : index
    %10 = vector.load %arg6[%c0_10, %c0_11] : memref<256x8xbf16, #tpu.memory_space<vmem>>, vector<256x8xbf16>
    %cst_12 = arith.constant dense<0.000000e+00> : vector<40x8xf32>
    %11 = tpu.matmul %3, %10, %cst_12 {dimension_numbers = #tpu.dot_dimension_numbers<[1], [0], [0], [1], [0, 0, 1, 1], [], []>} : vector<40x256xbf16>, vector<256x8xbf16>, vector<40x8xf32> -> vector<40x8xf32>
    %12 = arith.addf %9, %11 : vector<40x8xf32>
    %c0_13 = arith.constant 0 : index
    %c0_14 = arith.constant 0 : index
    %13 = vector.load %arg10[%c0_13, %c0_14] : memref<40x8xf32, #tpu.memory_space<vmem>>, vector<40x8xf32>
    tpu.vector_store %arg10[%c0_13, %c0_14], %12 {strides = array<i32>} : memref<40x8xf32, #tpu.memory_space<vmem>>, vector<40x8xf32>,
    %c0_i32_15 = arith.constant 0 : i32
    %14 = arith.cmpi eq, %arg2, %c0_i32_15 : i32
    %15 = arith.extui %14 : i1 to i32
    %c0_i32_16 = arith.constant 0 : i32
    %16 = arith.cmpi ne, %15, %c0_i32_16 : i32
    scf.if %16 {
      %c0_17 = arith.constant 0 : index
      %c0_18 = arith.constant 0 : index
      %17 = vector.load %arg10[%c0_17, %c0_18] : memref<40x8xf32, #tpu.memory_space<vmem>>, vector<40x8xf32>
      %18 = arith.truncf %17 : vector<40x8xf32> to vector<40x8xbf16>
      %c0_19 = arith.constant 0 : index
      %c0_20 = arith.constant 0 : index
      %19 = vector.load %arg7[%c0_19, %c0_20] : memref<8x256xbf16, #tpu.memory_space<vmem>>, vector<8x256xbf16>
      %cst_21 = arith.constant dense<0.000000e+00> : vector<40x256xf32>
      %20 = tpu.matmul %18, %19, %cst_21 {dimension_numbers = #tpu.dot_dimension_numbers<[1], [0], [0], [1], [0, 0, 1, 1], [], []>} : vector<40x8xbf16>, vector<8x256xbf16>, vector<40x256xf32> -> vector<40x256xf32>
      %c0_22 = arith.constant 0 : index
      %c0_23 = arith.constant 0 : index
      %21 = vector.load %arg9[%c0_22, %c0_23] : memref<40x256xf32, #tpu.memory_space<vmem>>, vector<40x256xf32>
      %c0_24 = arith.constant 0 : index
      %c0_25 = arith.constant 0 : index
      %22 = vector.load %arg5[%c0_24, %c0_25] : memref<1x256xf32, #tpu.memory_space<vmem>>, vector<1x256xf32>
      %23 = vector.broadcast %22 : vector<1x256xf32> to vector<40x256xf32>
      %24 = arith.addf %21, %23 : vector<40x256xf32>
      %25 = arith.addf %24, %20 : vector<40x256xf32>
      %c0_26 = arith.constant 0 : index
      %c0_27 = arith.constant 0 : index
      %26 = vector.load %arg8[%c0_26, %c0_27] : memref<40x256xf32, #tpu.memory_space<vmem>>, vector<40x256xf32>
      tpu.vector_store %arg8[%c0_26, %c0_27], %25 {strides = array<i32>} : memref<40x256xf32, #tpu.memory_space<vmem>>, vector<40x256xf32>,
    } else {
    }
    return
  }
  func.func @transform_0(%arg0: i32, %arg1: i32, %arg2: i32) -> (i32, i32) {
    %c0_i32 = arith.constant 0 : i32
    return %arg0, %arg2 : i32, i32
  }
  func.func @transform_1(%arg0: i32, %arg1: i32, %arg2: i32) -> (i32, i32) {
    %c0_i32 = arith.constant 0 : i32
    return %arg2, %arg1 : i32, i32
  }
  func.func @transform_2(%arg0: i32, %arg1: i32, %arg2: i32) -> (i32, i32) {
    %c0_i32 = arith.constant 0 : i32
    %c0_i32_0 = arith.constant 0 : i32
    return %c0_i32, %arg1 : i32, i32
  }
  func.func @transform_3(%arg0: i32, %arg1: i32, %arg2: i32) -> (i32, i32) {
    %c0_i32 = arith.constant 0 : i32
    %c0_i32_0 = arith.constant 0 : i32
    return %arg2, %c0_i32 : i32, i32
  }
  func.func @transform_4(%arg0: i32, %arg1: i32, %arg2: i32) -> (i32, i32) {
    %c0_i32 = arith.constant 0 : i32
    %c0_i32_0 = arith.constant 0 : i32
    return %c0_i32, %arg1 : i32, i32
  }
  func.func @transform_5(%arg0: i32, %arg1: i32, %arg2: i32) -> (i32, i32) {
    %c0_i32 = arith.constant 0 : i32
    return %arg0, %arg1 : i32, i32
  }
}

</mosaic_0001>

<bundles_post_ra>
// kernel: tpu_custom_call.1
= control target key start
LH: loop header
LB: loop body
LE: loop exit
PB: predicated region body
PF: predicated region fallthrough
CT: control target
= control target key end

     0   :  { %10 = vsyncpa [#allocation5], 0  ;;  %s1092_s0 = inlined_call_operand.vmem [shape: bf16[40,256], index: 0, kind: input, shape index: {}]   ;;  %s1093_s1 = inlined_call_operand.hbm [shape: bf16[256,256], index: 1, kind: input, shape index: {}]   ;;  %s1094_s2 = inlined_call_operand.vmem [shape: f32[1,256], index: 2, kind: input, shape index: {}]   ;;  %s1095_s3 = inlined_call_operand.vmem [shape: bf16[256,8], index: 3, kind: input, shape index: {}]   ;;  %s1096_s4 = inlined_call_operand.vmem [shape: bf16[8,256], index: 4, kind: input, shape index: {}]   ;;  %s1097_s5 = inlined_call_operand.hbm [shape: f32[40,256], index: 5, kind: output, shape index: {}]  }
   0x1   :  { %11 = vsyncpa [#allocation6], 0  ;;  %s954_s18 = smov [#allocation4]  }
   0x2   :  { %s19_s19 = sshll.u32 %s954_s18, 4  ;;  %s20_s19 = int_to_ptr.vmem [resolvable:$true] %s19_s19 }
   0x3   :  { %s918_s20 = scalar_lea.vmem %s20_s19, 4096  ;;  %p923_p1 = scmp.lt.s32.totalorder %s20_s19, %s20_s19 }
   0x4   :  { %p919_p0 = scmp.ne.s32.totalorder %s20_s19, %s918_s20  ;;  %p924_p2 = scmp.lt.s32.totalorder %s918_s20, %s918_s20 }
   0x6   :  { %p925_p3 = por %p924_p2, %p923_p1 }
   0x8   :  { %p926_p4 = pnand %p925_p3, %p919_p0 }
   0xa   :  { %929 = shalt.err (!%p926_p4)
}
   0xb   :  { %s955_s21 = smov 128   ;;  %s956_s22 = smov 8  }
   0xc   :  { %25 = dma.hbm_to_vmem [thread:$0]  %s1093_s1, 4096, %s20_s19, [#allocation5], %s955_s21, %s955_s21, %s956_s22  }
   0xd   :  { %950 = dma.done.wait [#allocation5], 4096  }
   0xe   :  { %951 = vsyncadd [#allocation5], 4294963200  ;;  %v836_v0 = vld [vmem:[%s1095_s3 + $0x78] sm:$0xff]   ;;  %v838_v2 = vld [vmem:[%s1095_s3 + $0x70] sm:$0xff]   ;;  %vm597_vm0 = vcmask 1043456   ;;  %vm50_vm1 = vcmask 64512  }
   0xf   :  { %v837_v1 = vld [vmem:[%s1095_s3 + $0x38] sm:$0xff]   ;;  %794 = vmatprep.subr.bf16.mxu1 %v836_v0  ;;  %v839_v3 = vld [vmem:[%s1095_s3 + $0x30] sm:$0xff]   ;;  %v840_v4 = vld [vmem:[%s1095_s3 + $0x68] sm:$0xff]   ;;  %v957_v53 = vmov 0.0   ;;  %v958_v60 = vmov 0  }
  0x10   :  { %795 = vmatpush3.bf16.msra.mxu1 %v837_v1  ;;  %v841_v5 = vld [vmem:[%s1095_s3 + $0x28] sm:$0xff]   ;;  %v842_v6 = vld [vmem:[%s1095_s3 + $0x60] sm:$0xff]   ;;  %v844_v8 = vld [vmem:[%s1095_s3 + $0x58] sm:$0xff]   ;;  %51 = vst.msk [vmem:[#allocation3] sm:$0xff] %vm50_vm1, %v957_v53 }
  0x11   :  { %796 = vmatprep.subr.bf16.mxu1 %v838_v2  ;;  %v843_v7 = vld [vmem:[%s1095_s3 + $0x20] sm:$0xff]   ;;  %v845_v9 = vld [vmem:[%s1095_s3 + $0x18] sm:$0xff]   ;;  %v846_v10 = vld [vmem:[%s1095_s3 + $0x50] sm:$0xff]   ;;  %52 = vst.msk [vmem:[#allocation3 + $0x8] sm:$0xff] %vm50_vm1, %v957_v53 }
  0x12   :  { %v854_v11 = vld [vmem:[%s1092_s0 + $0x4] ss:$8 sps:$4 sm:$0xff]   ;;  %v847_v12 = vld [vmem:[%s1095_s3 + $0x10] sm:$0xff]   ;;  %v862_v15 = vld [vmem:[#allocation4 + $0x70] ss:$8 sps:$4 sm:$0xff]   ;;  %53 = vst.msk [vmem:[#allocation3 + $0x10] sm:$0xff] %vm50_vm1, %v957_v53 }
  0x13   :  { %v848_v13 = vld [vmem:[%s1095_s3 + $0x48] sm:$0xff]   ;;  %536 = vmatprep.mubr.bf16.mxu1 %v854_v11  ;;  %v860_v14 = vld [vmem:[#allocation4 + $0x74] ss:$8 sps:$4 sm:$0xff]   ;;  %322 = vmatprep.mubr.bf16.mxu0 %v854_v11  ;;  %v868_v22 = vld [vmem:[#allocation4 + $0x50] ss:$8 sps:$4 sm:$0xff]   ;;  %54 = vst.msk [vmem:[#allocation3 + $0x18] sm:$0xff] %vm50_vm1, %v957_v53 }
  0x14   :  { %797 = vmatpush3.bf16.msra.mxu1 %v839_v3  ;;  %290 = vmatprep.subr.bf16.mxu0 %v860_v14  ;;  %v863_v16 = vld [vmem:[#allocation4 + $0x64] ss:$8 sps:$4 sm:$0xff]   ;;  %v865_v18 = vld [vmem:[#allocation4 + $0x60] ss:$8 sps:$4 sm:$0xff]   ;;  %v866_v19 = vld [vmem:[#allocation4 + $0x54] ss:$8 sps:$4 sm:$0xff]  }
  0x15   :  { %798 = vmatprep.subr.bf16.mxu1 %v840_v4  ;;  %v849_v17 = vld [vmem:[%s1095_s3 + $0x8] sm:$0xff]   ;;  %291 = vmatpush1.bf16.msra.mxu0 %v862_v15  ;;  %v850_v20 = vld [vmem:[%s1095_s3 + $0x40] sm:$0xff]   ;;  %v1054_v25 = vld [vmem:[%s1092_s0 + $0x14] ss:$8 sps:$4 sm:$0xff]   ;;  %55 = vst.msk [vmem:[#allocation3 + $0x20] sm:$0xff] %vm50_vm1, %v957_v53 }
  0x16   :  { %292 = vmatprep.subr.bf16.mxu0 %v863_v16  ;;  %v851_v21 = vld [vmem:[%s1095_s3] sm:$0xff]   ;;  %v869_v23 = vld [vmem:[#allocation4 + $0x44] ss:$8 sps:$4 sm:$0xff]   ;;  %v871_v26 = vld [vmem:[#allocation4 + $0x40] ss:$8 sps:$4 sm:$0xff]  }
  0x17   :  { %v1049_v24 = vld [vmem:[%s1092_s0] ss:$8 sps:$4 sm:$0xff]   ;;  %v872_v27 = vld [vmem:[#allocation4 + $0x34] ss:$8 sps:$4 sm:$0xff]   ;;  %v875_v29 = vld [vmem:[#allocation4 + $0x24] ss:$8 sps:$4 sm:$0xff]  }
  0x18   :  { %799 = vmatpush3.bf16.msra.mxu1 %v841_v5  ;;  %v874_v28 = vld [vmem:[#allocation4 + $0x30] ss:$8 sps:$4 sm:$0xff]   ;;  %v877_v35 = vld [vmem:[#allocation4 + $0x20] ss:$8 sps:$4 sm:$0xff]   ;;  %v878_v38 = vld [vmem:[#allocation4 + $0x14] ss:$8 sps:$4 sm:$0xff]  }
  0x19   :  { %800 = vmatprep.subr.bf16.mxu1 %v842_v6  ;;  %293 = vmatpush1.bf16.msra.mxu0 %v865_v18  ;;  %v582_v30 = vld [vmem:[%s1096_s4] sm:$0xff]  ;;  %v1064_v31 = vld [vmem:[%s1092_s0 + $0x10] ss:$8 sps:$4 sm:$0xff]   ;;  %v881_v40 = vld [vmem:[#allocation4 + $0x4] ss:$8 sps:$4 sm:$0xff]  }
  0x1a   :  { %294 = vmatprep.subr.bf16.mxu0 %v866_v19  ;;  %v60_v32 = vld [vmem:[%s1092_s0 + $0x20] sm:$0xff]  ;;  %v789_v33 = vcombine.high %v582_v30, %v582_v30  ;;  %v788_v34 = vcombine.low %v582_v30, %v582_v30  ;;  %v883_v42 = vld [vmem:[#allocation4] ss:$8 sps:$4 sm:$0xff]   ;;  %v887_v45 = vld [vmem:[#allocation4 + $0xe4] ss:$8 sps:$4 sm:$0xff]  }
  0x1b   :  { %v739_v37 = vcombine.high %v60_v32, %v60_v32  ;;  %v880_v39 = vld [vmem:[#allocation4 + $0x10] ss:$8 sps:$4 sm:$0xff]   ;;  %v738_v41 = vcombine.low %v60_v32, %v60_v32  ;;  %v884_v43 = vld [vmem:[#allocation4 + $0xf4] ss:$8 sps:$4 sm:$0xff]   ;;  %v889_v46 = vld [vmem:[#allocation4 + $0xe0] ss:$8 sps:$4 sm:$0xff]  }
  0x1c   :  { %801 = vmatpush3.bf16.msra.mxu1 %v843_v7  ;;  %v599_v36 = vsel %vm597_vm0, %v788_v34, 0  ;;  %v886_v44 = vld [vmem:[#allocation4 + $0xf0] ss:$8 sps:$4 sm:$0xff]   ;;  %v890_v47 = vld [vmem:[#allocation4 + $0xd4] ss:$8 sps:$4 sm:$0xff]   ;;  %v372_v3 = vld [vmem:[#allocation3 + $0x8] sm:$0xff] }
  0x1d   :  { %802 = vmatprep.subr.bf16.mxu1 %v844_v8  ;;  %295 = vmatpush1.bf16.msra.mxu0 %v868_v22  ;;  %v892_v48 = vld [vmem:[#allocation4 + $0xd0] ss:$8 sps:$4 sm:$0xff]   ;;  %v893_v49 = vld [vmem:[#allocation4 + $0xc4] ss:$8 sps:$4 sm:$0xff]   ;;  %v895_v50 = vld [vmem:[#allocation4 + $0xc0] ss:$8 sps:$4 sm:$0xff]  }
  0x1e   :  { %296 = vmatprep.subr.bf16.mxu0 %v869_v23  ;;  %v897_v51 = vld [vmem:[#allocation4 + $0xb4] ss:$8 sps:$4 sm:$0xff]   ;;  %v900_v52 = vld [vmem:[#allocation4 + $0xb0] ss:$8 sps:$4 sm:$0xff]   ;;  %v901_v54 = vld [vmem:[#allocation4 + $0xa4] ss:$8 sps:$4 sm:$0xff]  }
  0x1f   :  { %v903_v55 = vld [vmem:[#allocation4 + $0xa0] ss:$8 sps:$4 sm:$0xff]   ;;  %v904_v56 = vld [vmem:[#allocation4 + $0x94] ss:$8 sps:$4 sm:$0xff]   ;;  %v906_v57 = vld [vmem:[#allocation4 + $0x90] ss:$8 sps:$4 sm:$0xff]  }
  0x20   :  { %803 = vmatpush3.bf16.msra.mxu1 %v845_v9  ;;  %v907_v58 = vld [vmem:[#allocation4 + $0x84] ss:$8 sps:$4 sm:$0xff]   ;;  %v909_v59 = vld [vmem:[#allocation4 + $0x80] ss:$8 sps:$4 sm:$0xff]   ;;  %v371_v62 = vld [vmem:[#allocation3] sm:$0xff] }
  0x21   :  { %804 = vmatprep.subr.bf16.mxu1 %v846_v10  ;;  %297 = vmatpush1.bf16.msra.mxu0 %v871_v26  ;;  %v373_v8 = vld [vmem:[#allocation3 + $0x10] sm:$0xff]  ;;  %v375_v18 = vld [vmem:[#allocation3 + $0x20] sm:$0xff] }
  0x22   :  { %298 = vmatprep.subr.bf16.mxu0 %v872_v27 }
  0x24   :  { %805 = vmatpush3.bf16.msra.mxu1 %v847_v12 }
  0x25   :  { %806 = vmatprep.subr.bf16.mxu1 %v848_v13  ;;  %299 = vmatpush1.bf16.msra.mxu0 %v874_v28  ;;  %v374_v13 = vld [vmem:[#allocation3 + $0x18] sm:$0xff] }
  0x26   :  { %300 = vmatprep.subr.bf16.mxu0 %v875_v29 }
  0x28   :  { %807 = vmatpush3.bf16.msra.mxu1 %v849_v17 }
  0x29   :  { %808 = vmatprep.subr.bf16.mxu1 %v850_v20  ;;  %301 = vmatpush1.bf16.msra.mxu0 %v877_v35 }
  0x2a   :  { %302 = vmatprep.subr.bf16.mxu0 %v878_v38 }
  0x2c   :  { %809 = vmatpush3.bf16.msra.mxu1 %v851_v21 }
  0x2d   :  { %790 = vmatprep.subr.msk.bf16.mxu1 %vm597_vm0, %v789_v33  ;;  %303 = vmatpush1.bf16.msra.mxu0 %v880_v39 }
  0x2e   :  { %304 = vmatprep.subr.bf16.mxu0 %v881_v40 }
  0x2f   :  { %537 = vmatmul.mubr.bf16.vlgmr.msra.gmra.mxu1 %v1049_v24 }
  0x30   :  { %544 = vmatprep.mubr.bf16.mxu1 %v1054_v25  ;;  %619 = vmatpush1.bf16.msra.mxu1 %v599_v36 }
  0x31   :  { %305 = vmatpush1.bf16.msra.mxu0 %v883_v42 }
  0x32   :  { %306 = vmatprep.subr.bf16.mxu0 %v884_v43 }
  0x35   :  { %307 = vmatpush2.bf16.msra.mxu0 %v886_v44  ;;  %v677_v44 = vlaneseq }
  0x36   :  { %308 = vmatprep.subr.bf16.mxu0 %v887_v45 }
  0x37   :  { %545 = vmatmul.mubr.bf16.gmra.mxu1 %v1064_v31  ;;  %v678_v45 = vshrl.u32 %v677_v44, 7 }
  0x38   :  { %552 = vmatprep.mubr.bf16.mxu1 %v739_v37 }
  0x39   :  { %309 = vmatpush2.bf16.msra.mxu0 %v889_v46  ;;  %v679_v46 = vsub.s32 0, %v678_v45 }
  0x3a   :  { %310 = vmatprep.subr.bf16.mxu0 %v890_v47  ;;  %v675_v47 = vld [vmem:[%s1094_s2] sm:$0x3]  ;;  %s959_s2 = smov [#allocation7]  }
  0x3b   :  { %s722_s16 = sshll.u32 %s959_s2, 4  ;;  %s723_s16 = int_to_ptr.vmem [resolvable:$true] %s722_s16 }
  0x3c   :  { %s930_s17 = scalar_lea.vmem %s723_s16, 1280  ;;  %p935_p6 = scmp.lt.s32.totalorder %s723_s16, %s723_s16 }
  0x3d   :  { %311 = vmatpush2.bf16.msra.mxu0 %v892_v48  ;;  %v680_v48 = vrot.slane %v675_v47, %v679_v46  ;;  %p931_p5 = scmp.ne.s32.totalorder %s723_s16, %s930_s17  ;;  %p936_p7 = scmp.lt.s32.totalorder %s930_s17, %s930_s17 }
  0x3e   :  { %312 = vmatprep.subr.bf16.mxu0 %v893_v49  ;;  %v683_v49 = vsub.s32 1, %v678_v45 }
  0x3f   :  { %553 = vmatmul.mubr.bf16.gmra.mxu1 %v738_v41  ;;  %p937_p8 = por %p936_p7, %p935_p6 }
  0x40   :  { %636 = vmatprep.mubr.bf16.mxu1 %v958_v60 }
  0x41   :  { %313 = vmatpush2.bf16.msra.mxu0 %v895_v50  ;;  %p938_p9 = pnand %p937_p8, %p931_p5 }
  0x42   :  { %314 = vmatprep.subr.bf16.mxu0 %v897_v51  ;;  %v684_v51 = vrot.slane %v675_v47, %v683_v49 }
  0x45   :  { %315 = vmatpush2.bf16.msra.mxu0 %v900_v52 }
  0x46   :  { %316 = vmatprep.subr.bf16.mxu0 %v901_v54 }
  0x49   :  { %317 = vmatpush2.bf16.msra.mxu0 %v903_v55 }
  0x4a   :  { %318 = vmatprep.subr.bf16.mxu0 %v904_v56 }
  0x4d   :  { %319 = vmatpush2.bf16.msra.mxu0 %v906_v57 }
  0x4e   :  { %320 = vmatprep.subr.bf16.mxu0 %v907_v58 }
  0x51   :  { %321 = vmatpush2.bf16.msra.mxu0 %v909_v59 }
  0x54   :  { %323 = vmatmul.mubr.bf16.vlgmr.msra.gmra.mxu0 %v1049_v24 }
  0x55   :  { %332 = vmatprep.mubr.bf16.mxu0 %v1054_v25 }
  0x5c   :  { %333 = vmatmul.mubr.bf16.gmra.mxu0 %v1064_v31 }
  0x5d   :  { %342 = vmatprep.mubr.bf16.mxu0 %v739_v37 }
  0x64   :  { %343 = vmatmul.mubr.bf16.gmra.mxu0 %v738_v41 }
  0xef   :  { %v810_v61 = vpop.f32.mrf.mxu1 }
  0xf1   :  { %v811_v63 = vpop.f32.mrf.mxu1 }
  0xf2   :  { %v812_v0 = vadd.f32 %v811_v63, %v810_v61 }
  0xf3   :  { %v813_v1 = vpop.f32.mrf.mxu1 }
  0xf4   :  { %v560_v2 = vadd.f32 %v812_v0, %v371_v62 }
  0xf5   :  { %v814_v4 = vpop.f32.mrf.mxu1 }
  0xf6   :  { %566 = vst.msk [vmem:[#allocation3] sm:$0xff] %vm50_vm1, %v560_v2  ;;  %v815_v5 = vadd.f32 %v814_v4, %v813_v1 }
  0xf7   :  { %v816_v6 = vpop.f32.mrf.mxu1 }
  0xf8   :  { %v561_v7 = vadd.f32 %v815_v5, %v372_v3 }
  0xf9   :  { %v817_v9 = vpop.f32.mrf.mxu1 }
  0xfa   :  { %567 = vst.msk [vmem:[#allocation3 + $0x8] sm:$0xff] %vm50_vm1, %v561_v7  ;;  %v818_v10 = vadd.f32 %v817_v9, %v816_v6 }
  0xfb   :  { %v819_v11 = vpop.f32.mrf.mxu1 }
  0xfc   :  { %v562_v12 = vadd.f32 %v818_v10, %v373_v8 }
  0xfd   :  { %v820_v14 = vpop.f32.mrf.mxu1  ;;  %v574_v20 = vld [vmem:[#allocation3] sm:$0xff] }
  0xfe   :  { %568 = vst.msk [vmem:[#allocation3 + $0x10] sm:$0xff] %vm50_vm1, %v562_v12  ;;  %v821_v15 = vadd.f32 %v820_v14, %v819_v11 }
  0xff   :  { %v822_v16 = vpop.f32.mrf.mxu1 }
 0x100   :  { %v563_v17 = vadd.f32 %v821_v15, %v374_v13 }
 0x101   :  { %v823_v19 = vpop.f32.mrf.mxu1  ;;  %v575_v21 = vld [vmem:[#allocation3 + $0x8] sm:$0xff] }
 0x102   :  { %569 = vst.msk [vmem:[#allocation3 + $0x18] sm:$0xff] %vm50_vm1, %v563_v17  ;;  %v824_v22 = vadd.f32 %v823_v19, %v822_v16  ;;  %v579_v23 = vpack.c.bf16 %v575_v21, %v574_v20 }
 0x103   :  { %v825_v24 = vpop.f32.mrf.mxu1 }
 0x104   :  { %v564_v25 = vadd.f32 %v824_v22, %v375_v18  ;;  %791 = vmatmul.mubr.msk.bf16.vlgmr.msra.gmra.mxu1 %vm50_vm1, %v579_v23 }
 0x105   :  { %v826_v26 = vpop.f32.mrf.mxu1  ;;  %646 = vmatprep.mubr.bf16.mxu1 %v958_v60  ;;  %v576_v27 = vld [vmem:[#allocation3 + $0x10] sm:$0xff] }
 0x106   :  { %570 = vst.msk [vmem:[#allocation3 + $0x20] sm:$0xff] %vm50_vm1, %v564_v25 }
 0x109   :  { %v577_v28 = vld [vmem:[#allocation3 + $0x18] sm:$0xff] }
 0x10a   :  { %v580_v29 = vpack.c.bf16 %v577_v28, %v576_v27 }
 0x10c   :  { %792 = vmatmul.mubr.msk.bf16.gmra.mxu1 %vm50_vm1, %v580_v29 }
 0x10d   :  { %656 = vmatprep.mubr.bf16.mxu1 %v958_v60  ;;  %v578_v30 = vld [vmem:[#allocation3 + $0x20] sm:$0xff] }
 0x10e   :  { %v581_v31 = vpack.c.bf16 %v578_v30, %v578_v30 }
 0x114   :  { %793 = vmatmul.mubr.msk.bf16.gmra.mxu1 %vm50_vm1, %v581_v31  ;;  %v324_v32 = vpop.f32.mrf.mxu0 }
 0x115   :  { %v687_v50 = vadd.f32 %v680_v48, %v324_v32 }
 0x116   :  { %v326_v33 = vpop.f32.mrf.mxu0 }
 0x117   :  { %v688_v53 = vadd.f32 %v684_v51, %v326_v33 }
 0x118   :  { %v328_v34 = vpop.f32.mrf.mxu0 }
 0x119   :  { %v689_v56 = vadd.f32 %v680_v48, %v328_v34 }
 0x11a   :  { %v330_v35 = vpop.f32.mrf.mxu0 }
 0x11b   :  { %v690_v59 = vadd.f32 %v684_v51, %v330_v35 }
 0x11c   :  { %v334_v36 = vpop.f32.mrf.mxu0 }
 0x11d   :  { %v691_v60 = vadd.f32 %v680_v48, %v334_v36 }
 0x11e   :  { %v336_v37 = vpop.f32.mrf.mxu0 }
 0x11f   :  { %v692_v1 = vadd.f32 %v684_v51, %v336_v37 }
 0x120   :  { %v338_v38 = vpop.f32.mrf.mxu0 }
 0x121   :  { %v693_v4 = vadd.f32 %v680_v48, %v338_v38 }
 0x122   :  { %v340_v39 = vpop.f32.mrf.mxu0 }
 0x123   :  { %v694_v7 = vadd.f32 %v684_v51, %v340_v39 }
 0x124   :  { %v344_v40 = vpop.f32.mrf.mxu0 }
 0x125   :  { %v695_v8 = vadd.f32 %v680_v48, %v344_v40 }
 0x126   :  { %v346_v41 = vpop.f32.mrf.mxu0 }
 0x127   :  { %v696_v13 = vadd.f32 %v684_v51, %v346_v41 }
 0x128   :  { %v348_v42 = vpop.f32.mrf.mxu0 }
 0x12a   :  { %v349_v43 = vpop.f32.mrf.mxu0 }
 0x1c4   :  { %v638_v52 = vpop.f32.mrf.mxu1 }
 0x1c5   :  { %v697_v54 = vadd.f32 %v687_v50, %v638_v52 }
 0x1c6   :  { %v640_v55 = vpop.f32.mrf.mxu1 }
 0x1c7   :  { %707 = vst [vmem:[#allocation7] sm:$0xff] %v697_v54  ;;  %v698_v57 = vadd.f32 %v688_v53, %v640_v55 }
 0x1c8   :  { %v642_v58 = vpop.f32.mrf.mxu1 }
 0x1c9   :  { %708 = vst [vmem:[#allocation7 + $0x8] sm:$0xff] %v698_v57  ;;  %v699_v61 = vadd.f32 %v689_v56, %v642_v58 }
 0x1ca   :  { %v644_v62 = vpop.f32.mrf.mxu1 }
 0x1cb   :  { %709 = vst [vmem:[#allocation7 + $0x10] sm:$0xff] %v699_v61  ;;  %v700_v63 = vadd.f32 %v690_v59, %v644_v62 }
 0x1cc   :  { %v648_v0 = vpop.f32.mrf.mxu1 }
 0x1cd   :  { %710 = vst [vmem:[#allocation7 + $0x18] sm:$0xff] %v700_v63  ;;  %v701_v2 = vadd.f32 %v691_v60, %v648_v0 }
 0x1ce   :  { %v650_v3 = vpop.f32.mrf.mxu1 }
 0x1cf   :  { %711 = vst [vmem:[#allocation7 + $0x20] sm:$0xff] %v701_v2  ;;  %v702_v5 = vadd.f32 %v692_v1, %v650_v3 }
 0x1d0   :  { %v652_v6 = vpop.f32.mrf.mxu1 }
 0x1d1   :  { %712 = vst [vmem:[#allocation7 + $0x28] sm:$0xff] %v702_v5  ;;  %v703_v9 = vadd.f32 %v693_v4, %v652_v6 }
 0x1d2   :  { %v654_v10 = vpop.f32.mrf.mxu1 }
 0x1d3   :  { %713 = vst [vmem:[#allocation7 + $0x30] sm:$0xff] %v703_v9  ;;  %v704_v11 = vadd.f32 %v694_v7, %v654_v10 }
 0x1d4   :  { %v658_v12 = vpop.f32.mrf.mxu1 }
 0x1d5   :  { %714 = vst [vmem:[#allocation7 + $0x38] sm:$0xff] %v704_v11  ;;  %v705_v14 = vadd.f32 %v695_v8, %v658_v12 }
 0x1d6   :  { %v660_v15 = vpop.f32.mrf.mxu1 }
 0x1d7   :  { %715 = vst [vmem:[#allocation7 + $0x40] sm:$0xff] %v705_v14  ;;  %v706_v16 = vadd.f32 %v696_v13, %v660_v15 }
 0x1d8   :  { %v662_v17 = vpop.f32.mrf.mxu1 }
 0x1d9   :  { %716 = vst [vmem:[#allocation7 + $0x48] sm:$0xff] %v706_v16 }
 0x1da   :  { %v663_v18 = vpop.f32.mrf.mxu1 }
 0x1db   :  { %941 = shalt.err (!%p938_p9)
}
 0x1dc   :  { %s960_s18 = smov 256   ;;  %s961_s19 = smov 16  }
 0x1dd   :  { %728 = dma.vmem_to_hbm [thread:$0]  %s723_s16, 1280, %s1097_s5, [#allocation6], %s960_s18, %s960_s18, %s961_s19  }
 0x1de   :  { %952 = dma.done.wait [#allocation6], 1280  }
 0x1df   :  { %953 = vsyncadd [#allocation6], 4294966016 }
 0x1e0   :  { %732 = vsyncpa [#allocation5], 1 }
 0x1e1   :  { %733 = vsyncpa [#allocation6], 1 }

</bundles_post_ra>
